<compile_context>
chip_gen: v7x
topology: tpu7x:2x2x1
jax: 0.10.0
libtpu: 0.0.40
codegen_flags: <defaults>
</compile_context>

<pallas_src>
import jax
import jax.numpy as jnp
from jax.experimental import pallas as pl
from jax.experimental.pallas import tpu as pltpu

LANE = 128


def _round_up(x, m):
    return (x + m - 1) // m * m


def mlp_softmax_kernel(idx_ref, ew1_ref, b1_ref, w2_ref, b2_ref, o_ref):
    """One row-tile of tokens: fused gather+Linear1 -> ReLU -> Linear2 -> softmax.

    idx_ref : [TM, 1]      int32 token ids
    ew1_ref : [Vpad, D]    bf16 fused (embedding @ W1) table (resident, pad rows zero)
    b1_ref  : [1, D]       f32
    w2_ref  : [D, Vpad]    bf16
    b2_ref  : [1, Vpad]    f32 (-1e30 on pad cols)
    o_ref   : [TM, Vpad]   bf16 softmax probabilities (lane-dense)
    """
    ids = idx_ref[...]                                    # [TM, 1] int32
    tm = ids.shape[0]
    vpad = ew1_ref.shape[0]

    # Embedding gather fused with Linear1 as a one-hot MXU matmul:
    # one_hot[t] @ (E @ W1) == E[id_t] @ W1 exactly for 0/1 weights.
    vocab_iota = jax.lax.broadcasted_iota(jnp.int32, (tm, vpad), 1)
    one_hot = (vocab_iota == ids).astype(ew1_ref.dtype)   # [TM, Vpad] bf16

    h = jnp.dot(one_hot, ew1_ref[...],
                preferred_element_type=jnp.float32) + b1_ref[...]      # [TM, D] f32
    # ReLU fused with the bf16 downcast -> only one f32 TMxD slab is live.
    h = jnp.maximum(h, 0.0).astype(w2_ref.dtype)                       # [TM, D] bf16

    # Linear 2 (pad columns carry -1e30 bias -> exp() == 0 below).
    a = jnp.dot(h, w2_ref[...],
                preferred_element_type=jnp.float32) + b2_ref[...]      # [TM, Vpad] f32

    # Numerically stable softmax over the (padded) vocab dim.
    m = jnp.max(a, axis=-1, keepdims=True)
    e = jnp.exp(a - m)
    denom = jnp.sum(e, axis=-1, keepdims=True)
    o_ref[...] = (e * pl.reciprocal(denom, approx=True)).astype(o_ref.dtype)


def prepare_params(params, *, compute_dtype=jnp.bfloat16):
    """One-time weight prep (fold Linear1 into the embedding, pad vocab, cast).

    Do this once and reuse across forward calls; it re-materializes more HBM than the
    kernel itself if done per call.
    """
    emb = params["embedding"]                  # [V, D] f32
    w1, b1 = params["w1"], params["b1"]        # [D, D], [D]
    w2, b2 = params["w2"], params["b2"]        # [D, V], [V]
    V, D = emb.shape
    Vpad = _round_up(V, LANE)

    # Fused table: EW1[v] = emb[v] @ W1 (computed in f32, stored bf16); pad rows zero.
    ew1 = jnp.dot(emb.astype(jnp.float32), w1.astype(jnp.float32),
                  preferred_element_type=jnp.float32)                   # [V, D]
    ew1_p = jnp.zeros((Vpad, D), compute_dtype).at[:V, :].set(ew1.astype(compute_dtype))

    b1_c = b1.reshape(1, D).astype(jnp.float32)
    w2_p = jnp.zeros((D, Vpad), compute_dtype).at[:, :V].set(w2.astype(compute_dtype))
    b2_p = (jnp.full((1, Vpad), -1e30, jnp.float32)
            .at[:, :V].set(b2.reshape(1, V).astype(jnp.float32)))

    return {
        "ew1": ew1_p, "b1": b1_c, "w2": w2_p, "b2": b2_p,
        "V": V, "D": D, "Vpad": Vpad,
    }


def _choose_tm(n, tm_target, min_grid=2):
    """Pick a row tile that (a) is a multiple of 8 sublanes and (b) leaves the grid with
    at least `min_grid` steps so both v7x TensorCores get work."""
    n8 = _round_up(max(n, 1), 8)
    tm = min(tm_target, _round_up(pl.cdiv(n8, min_grid), 8))
    return max(tm, 8)


def simple_broken_model_forward(idx, prepared, *, tm_target=256, out_dtype=jnp.bfloat16):
    """Forward pass matching SimpleBrokenModel.forward(idx) (no targets branch).

    `prepared` is the output of prepare_params(). tm_target: ~512 for big N on v6e/v7x
    (fills the 256-wide MXU rows), 128-256 on v5e (keeps f32 slabs off its single vst slot).
    """
    ew1_p, b1_c = prepared["ew1"], prepared["b1"]
    w2_p, b2_p = prepared["w2"], prepared["b2"]
    V, D, Vpad = prepared["V"], prepared["D"], prepared["Vpad"]

    B, S = idx.shape
    N = B * S

    # --- row tiling over tokens (grid >= 2 steps for v7x megacore sharding) ------------
    TM = _choose_tm(N, tm_target)
    N_pad = _round_up(N, TM)
    idx_flat = (jnp.zeros((N_pad, 1), jnp.int32)
                .at[:N, 0].set(idx.reshape(N).astype(jnp.int32)))
    grid = (pl.cdiv(N_pad, TM),)

    # --- VMEM budget: single-buffered resident weights + double-buffered idx/out tiles
    #     + in-kernel intermediates + compiler headroom ---------------------------------
    bf16, f32 = 2, 4
    out_itemsize = jnp.dtype(out_dtype).itemsize
    resident = (Vpad * D + D * Vpad) * bf16 + (D + Vpad) * f32
    io_buffered = 2 * (TM * 1 * f32 + TM * Vpad * out_itemsize)
    intermediates = (TM * Vpad * bf16            # one_hot
                     + TM * D * (f32 + bf16)     # h f32 + bf16 cast
                     + 3 * TM * Vpad * f32)      # a, e, softmax scratch
    headroom = 2 << 20
    vmem_limit = int(min(64 << 20,
                         max(16 << 20, resident + io_buffered + intermediates + headroom)))

    out_flat = pl.pallas_call(
        mlp_softmax_kernel,
        out_shape=jax.ShapeDtypeStruct((N_pad, Vpad), out_dtype),
        grid_spec=pltpu.PrefetchScalarGridSpec(
            num_scalar_prefetch=0,
            grid=grid,
            in_specs=[
                pl.BlockSpec((TM, 1), lambda i: (i, 0)),       # idx tile (pipelined)
                pl.BlockSpec((Vpad, D), lambda i: (0, 0)),     # EW1 (resident)
                pl.BlockSpec((1, D), lambda i: (0, 0)),        # b1 (resident)
                pl.BlockSpec((D, Vpad), lambda i: (0, 0)),     # W2 (resident)
                pl.BlockSpec((1, Vpad), lambda i: (0, 0)),     # b2 (resident)
            ],
            out_specs=pl.BlockSpec((TM, Vpad), lambda i: (i, 0)),
        ),
        compiler_params=pltpu.CompilerParams(
            dimension_semantics=("parallel",),
            vmem_limit_bytes=vmem_limit,
        ),
    )(idx_flat, ew1_p, b1_c, w2_p, b2_p)

    # Drop padded rows / padded vocab columns and restore [B, S, V].
    # (If the consumer can work on the padded bf16 slab, defer this slice to it.)
    return out_flat[:N, :V].reshape(B, S, V)


def init_params(key, vocab_size, d_model):
    """Deterministic synthetic parameters matching the module's shapes."""
    k_emb, k_w1, k_b1, k_w2, k_b2 = jax.random.split(key, 5)
    return {
        # nn.Embedding(vocab_size, d_model)
        "embedding": jax.random.normal(k_emb, (vocab_size, d_model), jnp.float32),
        # nn.Linear(d_model, d_model)
        "w1": jax.random.normal(k_w1, (d_model, d_model), jnp.float32) * 0.02,
        "b1": jax.random.normal(k_b1, (d_model,), jnp.float32) * 0.02,
        # nn.Linear(d_model, vocab_size)
        "w2": jax.random.normal(k_w2, (d_model, vocab_size), jnp.float32) * 0.02,
        "b2": jax.random.normal(k_b2, (vocab_size,), jnp.float32) * 0.02,
    }


if __name__ == "__main__":
    # Small shapes consistent with the module's config (d_model=512, context_window=16,
    # tinyshakespeare-style char vocab of 65).
    batch = 2
    context_window = 16
    d_model = 512
    vocab_size = 65

    key = jax.random.PRNGKey(0)
    k_params, k_idx = jax.random.split(key)

    params = init_params(k_params, vocab_size, d_model)
    idx = jax.random.randint(k_idx, (batch, context_window), 0, vocab_size, dtype=jnp.int32)

    prepared = prepare_params(params)                      # one-time weight prep
    probs = simple_broken_model_forward(idx, prepared)
    jax.block_until_ready(probs)

    # Pure-JAX f32 reference (loose tolerance: bf16 weights/output + approx reciprocal).
    x_ref = jnp.take(params["embedding"], idx, axis=0)
    h_ref = jnp.maximum(x_ref @ params["w1"] + params["b1"], 0.0)
    ref = jax.nn.softmax(h_ref @ params["w2"] + params["b2"], axis=-1)

    assert probs.shape == (batch, context_window, vocab_size)
    probs_f32 = probs.astype(jnp.float32)
    row_sums = jnp.sum(probs_f32, axis=-1)
    assert bool(jnp.allclose(row_sums, 1.0, atol=2e-2))
    assert bool(jnp.allclose(probs_f32, ref, atol=2.5e-2))

    print("KERNEL_OK")
</pallas_src>

<mosaic_0001>
module attributes {stable_mosaic.version = 11 : i64} {
  func.func @mlp_softmax_kernel(%arg0: i32, %arg1: memref<16x1xi32, #tpu.memory_space<vmem>>, %arg2: memref<128x512xbf16, #tpu.memory_space<vmem>>, %arg3: memref<1x512xf32, #tpu.memory_space<vmem>>, %arg4: memref<512x128xbf16, #tpu.memory_space<vmem>>, %arg5: memref<1x128xf32, #tpu.memory_space<vmem>>, %arg6: memref<16x128xbf16, #tpu.memory_space<vmem>>) attributes {dimension_semantics = [#tpu.dimension_semantics<parallel>], iteration_bounds = array<i64: 2>, scalar_prefetch = 0 : i64, scratch_operands = 0 : i64, tpu.core_type = #tpu.core_type<tc>, window_params = [{transform_indices = @transform_0, window_bounds = array<i64: 16, 1>}, {pipeline_mode = #tpu.pipeline_mode<synchronous>, transform_indices = @transform_1, window_bounds = array<i64: 128, 512>}, {pipeline_mode = #tpu.pipeline_mode<synchronous>, transform_indices = @transform_2, window_bounds = array<i64: 1, 512>}, {pipeline_mode = #tpu.pipeline_mode<synchronous>, transform_indices = @transform_3, window_bounds = array<i64: 512, 128>}, {pipeline_mode = #tpu.pipeline_mode<synchronous>, transform_indices = @transform_4, window_bounds = array<i64: 1, 128>}, {transform_indices = @transform_5, window_bounds = array<i64: 16, 128>}]} {
    %c0 = arith.constant 0 : index
    %c0_0 = arith.constant 0 : index
    %0 = vector.load %arg1[%c0, %c0_0] : memref<16x1xi32, #tpu.memory_space<vmem>>, vector<16x1xi32>
    %1 = tpu.iota {dimensions = array<i32: 1>} : vector<16x128xi32>
    %2 = vector.broadcast %0 : vector<16x1xi32> to vector<16x128xi32>
    %3 = arith.cmpi eq, %1, %2 : vector<16x128xi32>
    %4 = arith.extui %3 : vector<16x128xi1> to vector<16x128xi32>
    %5 = arith.sitofp %4 : vector<16x128xi32> to vector<16x128xf32>
    %6 = arith.truncf %5 : vector<16x128xf32> to vector<16x128xbf16>
    %c0_1 = arith.constant 0 : index
    %c0_2 = arith.constant 0 : index
    %7 = vector.load %arg2[%c0_1, %c0_2] : memref<128x512xbf16, #tpu.memory_space<vmem>>, vector<128x512xbf16>
    %cst = arith.constant dense<0.000000e+00> : vector<16x512xf32>
    %8 = tpu.matmul %6, %7, %cst {dimension_numbers = #tpu.dot_dimension_numbers<[1], [0], [0], [1], [0, 0, 1, 1], [], []>} : vector<16x128xbf16>, vector<128x512xbf16>, vector<16x512xf32> -> vector<16x512xf32>
    %c0_3 = arith.constant 0 : index
    %c0_4 = arith.constant 0 : index
    %9 = vector.load %arg3[%c0_3, %c0_4] : memref<1x512xf32, #tpu.memory_space<vmem>>, vector<1x512xf32>
    %10 = vector.broadcast %9 : vector<1x512xf32> to vector<16x512xf32>
    %11 = arith.addf %8, %10 : vector<16x512xf32>
    %cst_5 = arith.constant 0.000000e+00 : f32
    %12 = vector.broadcast %cst_5 : f32 to vector<16x512xf32>
    %13 = arith.maximumf %11, %12 : vector<16x512xf32>
    %14 = arith.truncf %13 : vector<16x512xf32> to vector<16x512xbf16>
    %c0_6 = arith.constant 0 : index
    %c0_7 = arith.constant 0 : index
    %15 = vector.load %arg4[%c0_6, %c0_7] : memref<512x128xbf16, #tpu.memory_space<vmem>>, vector<512x128xbf16>
    %cst_8 = arith.constant dense<0.000000e+00> : vector<16x128xf32>
    %16 = tpu.matmul %14, %15, %cst_8 {dimension_numbers = #tpu.dot_dimension_numbers<[1], [0], [0], [1], [0, 0, 1, 1], [], []>} : vector<16x512xbf16>, vector<512x128xbf16>, vector<16x128xf32> -> vector<16x128xf32>
    %c0_9 = arith.constant 0 : index
    %c0_10 = arith.constant 0 : index
    %17 = vector.load %arg5[%c0_9, %c0_10] : memref<1x128xf32, #tpu.memory_space<vmem>>, vector<1x128xf32>
    %18 = vector.broadcast %17 : vector<1x128xf32> to vector<16x128xf32>
    %19 = arith.addf %16, %18 : vector<16x128xf32>
    %cst_11 = arith.constant dense<0xFF800000> : vector<16xf32>
    %20 = vector.multi_reduction <maximumf>, %19, %cst_11 [1] : vector<16x128xf32> to vector<16xf32>
    %21 = vector.shape_cast %20 : vector<16xf32> to vector<16x1xf32>
    %22 = vector.broadcast %21 : vector<16x1xf32> to vector<16x128xf32>
    %23 = arith.subf %19, %22 : vector<16x128xf32>
    %24 = math.exp %23 : vector<16x128xf32>
    %cst_12 = arith.constant dense<0.000000e+00> : vector<16xf32>
    %25 = vector.multi_reduction <add>, %24, %cst_12 [1] : vector<16x128xf32> to vector<16xf32>
    %26 = vector.shape_cast %25 : vector<16xf32> to vector<16x1xf32>
    %27 = tpu.reciprocal %26 {approx = true} : vector<16x1xf32> -> vector<16x1xf32>
    %28 = vector.broadcast %27 : vector<16x1xf32> to vector<16x128xf32>
    %29 = arith.mulf %24, %28 : vector<16x128xf32>
    %30 = arith.truncf %29 : vector<16x128xf32> to vector<16x128xbf16>
    %c0_13 = arith.constant 0 : index
    %c0_14 = arith.constant 0 : index
    %31 = vector.load %arg6[%c0_13, %c0_14] : memref<16x128xbf16, #tpu.memory_space<vmem>>, vector<16x128xbf16>
    tpu.vector_store %arg6[%c0_13, %c0_14], %30 {strides = array<i32>} : memref<16x128xbf16, #tpu.memory_space<vmem>>, vector<16x128xbf16>,
    return
  }
  func.func @transform_0(%arg0: i32) -> (i32, i32) {
    %c0_i32 = arith.constant 0 : i32
    %c0_i32_0 = arith.constant 0 : i32
    return %arg0, %c0_i32 : i32, i32
  }
  func.func @transform_1(%arg0: i32) -> (i32, i32) {
    %c0_i32 = arith.constant 0 : i32
    %c0_i32_0 = arith.constant 0 : i32
    %c0_i32_1 = arith.constant 0 : i32
    return %c0_i32, %c0_i32_0 : i32, i32
  }
  func.func @transform_2(%arg0: i32) -> (i32, i32) {
    %c0_i32 = arith.constant 0 : i32
    %c0_i32_0 = arith.constant 0 : i32
    %c0_i32_1 = arith.constant 0 : i32
    return %c0_i32, %c0_i32_0 : i32, i32
  }
  func.func @transform_3(%arg0: i32) -> (i32, i32) {
    %c0_i32 = arith.constant 0 : i32
    %c0_i32_0 = arith.constant 0 : i32
    %c0_i32_1 = arith.constant 0 : i32
    return %c0_i32, %c0_i32_0 : i32, i32
  }
  func.func @transform_4(%arg0: i32) -> (i32, i32) {
    %c0_i32 = arith.constant 0 : i32
    %c0_i32_0 = arith.constant 0 : i32
    %c0_i32_1 = arith.constant 0 : i32
    return %c0_i32, %c0_i32_0 : i32, i32
  }
  func.func @transform_5(%arg0: i32) -> (i32, i32) {
    %c0_i32 = arith.constant 0 : i32
    %c0_i32_0 = arith.constant 0 : i32
    return %arg0, %c0_i32 : i32, i32
  }
}

</mosaic_0001>

<bundles_post_ra>
// kernel: tpu_custom_call.1
= control target key start
LH: loop header
LB: loop body
LE: loop exit
PB: predicated region body
PF: predicated region fallthrough
CT: control target
= control target key end

     0   :  { %10 = vsyncpa [#allocation3], 0  ;;  %s1706_s0 = inlined_call_operand.vmem [shape: s32[32,1], index: 0, kind: input, shape index: {}]   ;;  %s1707_s1 = inlined_call_operand.hbm [shape: bf16[128,512], index: 1, kind: input, shape index: {}]   ;;  %s1708_s2 = inlined_call_operand.vmem [shape: f32[1,512], index: 2, kind: input, shape index: {}]   ;;  %s1709_s3 = inlined_call_operand.hbm [shape: bf16[512,128], index: 3, kind: input, shape index: {}]   ;;  %s1710_s4 = inlined_call_operand.vmem [shape: f32[1,128], index: 4, kind: input, shape index: {}]   ;;  %s1711_s5 = inlined_call_operand.hbm [shape: bf16[32,128], index: 5, kind: output, shape index: {}]  }
   0x1   :  { %11 = vsyncpa [#allocation6], 0 }
   0x2   :  { %12 = vsyncpa [#allocation4], 0 }
   0x3   :  { %14 = vsyncpa [#allocation4 + $0x1], 0  ;;  %s1524_s18 = smov 0   ;;  %s1526_s19 = smov 0  }
   0x4   :  { %s1528_s20 = smov 0   ;;  %s1530_s21 = smov 0  }
   0x5 LB: > { %s1545_s22 = sadd.s32 4294967295, %s1481_s21   ;;  %s1057_s23 = sadd.s32 4294967294, %s1481_s21   ;;  %s1481_s21 = sphi %s1530_s21, %s1729_s21   ;;  %s1477_s20 = sphi %s1528_s20, %s1728_s20   ;;  %s1473_s19 = sphi %s1526_s19, %s1727_s19   ;;  %s1469_s18 = sphi %s1524_s18, %s1726_s18  }
   0x6   : > { %s1549_s24 = sadd.s32 1, %s1481_s21   ;;  %s137_s25 = sadd.s32 1, %s1477_s20 }
   0x7   : > { %s134_s26 = ssub.s32 %s1481_s21, %s1549_s24  ;;  %p147_p0 = scmp.ne.s32.totalorder %s1477_s20, %s1473_s19 }
   0x8   : > { %p135_p1 = scmp.eq.s32.totalorder %s134_s26, 0  ;;  %p148_p2 = scmp.eq.s32.totalorder %s1545_s22, 1 }
   0x9   : > { %p153_p3 = scmp.ne.s32.totalorder %s1473_s19, %s1469_s18  ;;  %p154_p4 = scmp.eq.s32.totalorder %s1057_s23, 1 }
   0xa   : > { %s1560_s27 = scalar_select %p135_p1, %s1477_s20, %s137_s25  }
   0xb   : > { %p1562_p5 = por %p148_p2, %p147_p0  ;;  %p1566_p6 = por %p154_p4, %p153_p3 }
   0xc   : > { %p1058_p7 = scmp.ge.s32.totalorder %s1481_s21, 1  ;;  %p161_p8 = scmp.lt.s32.totalorder %s1481_s21, 3 }
   0xd   : > { %s1715_s28 = scalar_select %p1562_p5, 1, 0 }
   0xe   : > { %s1716_s29 = scalar_select %p1566_p6, 1, 0 }
   0xf   : > { %p1712_p9 = scmp.eq.s32.totalorder %s1545_s22, 0  ;;  %p1573_p10 = pnand %p1058_p7, %p161_p8 }
  0x10   : > { %s1483_s6 = smov [#allocation2]   ;;  %s1484_s9 = smov [#allocation5]  }
  0x11   : > { %s1717_s30 = scalar_select %p1573_p10, 1, 0 }
  0x12   : > { %s173_s7 = sshll.u32 %s1483_s6, 4  ;;  %p1208_p11 = pneg %p1573_p10  ;;  %s174_s7 = int_to_ptr.vmem [resolvable:$true] %s173_s7 }
  0x13   : > { %s189_s10 = sshll.u32 %s1484_s9, 4  ;;  %s1355_s13 = scalar_lea.hbm %s1707_s1, 4096  ;;  %s1585_s10 = int_to_ptr.vmem [resolvable:$true] %s189_s10 }
  0x14   : > { %p1581_p12 = pnand %p1712_p9, %p1208_p11  ;;  %p1356_p13 = scmp.ne.s32.totalorder %s1707_s1, %s1355_s13 }
  0x15   : > { %p1362_p3 = scmp.lt.u32.totalorder %s1355_s13, %s1707_s1 }
  0x16   : > { %p1357_p0 = pneg %p1581_p12 }
  0x18   : > { %p1358_p1 = pnand %p1357_p0, %p1356_p13 }
  0x1a   : > { %p1359_p2 = pneg %p1358_p1 }
  0x1c   : > { %p1364_p4 = pnand %p1362_p3, %p1359_p2 }
  0x1e   : > { %1367 = shalt.err (!%p1364_p4)
}
  0x1f   : > { %s1368_s23 = scalar_lea.vmem %s174_s7, 4096  ;;  %p1376_p9 = scmp.lt.s32.totalorder %s174_s7, %s174_s7 }
  0x20   : > { %p1369_p7 = scmp.ne.s32.totalorder %s174_s7, %s1368_s23  ;;  %p1377_p6 = scmp.lt.s32.totalorder %s1368_s23, %s1368_s23 }
  0x22   : > { %p1371_p8 = pnand %p1369_p7, %p1357_p0  ;;  %p1378_p5 = por %p1377_p6, %p1376_p9 }
  0x24   : > { %p1372_p11 = pneg %p1371_p8 }
  0x26   : > { %p1379_p10 = pnand %p1378_p5, %p1372_p11 }
  0x28   : > { %1382 = shalt.err (!%p1379_p10)
}
  0x29   : > { %s1485_s25 = smov 256   ;;  %s1486_s26 = smov 16  }
  0x2a   : > { %1211 = dma.hbm_to_vmem [thread:$0]  (!%p1581_p12), %s1707_s1, 4096, %s174_s7, [#allocation3], %s1485_s25, %s1485_s25, %s1486_s26  }
  0x2b   : > { %s1383_s13 = scalar_lea.hbm %s1709_s3, 4096 }
  0x2c   : > { %p1384_p13 = scmp.ne.s32.totalorder %s1709_s3, %s1383_s13  ;;  %p1390_p9 = scmp.lt.u32.totalorder %s1383_s13, %s1709_s3 }
  0x2e   : > { %p1386_p5 = pnand %p1384_p13, %p1357_p0 }
  0x30   : > { %p1387_p6 = pneg %p1386_p5 }
  0x32   : > { %p1392_p10 = pnand %p1390_p9, %p1387_p6 }
  0x34   : > { %1395 = shalt.err (!%p1392_p10)
}
  0x35   : > { %s1396_s7 = scalar_lea.vmem %s1585_s10, 4096  ;;  %p1404_p4 = scmp.lt.s32.totalorder %s1585_s10, %s1585_s10 }
  0x36   : > { %p1397_p1 = scmp.ne.s32.totalorder %s1585_s10, %s1396_s7  ;;  %p1405_p7 = scmp.lt.s32.totalorder %s1396_s7, %s1396_s7 }
  0x38   : > { %p1399_p2 = pnand %p1397_p1, %p1357_p0  ;;  %p1406_p8 = por %p1405_p7, %p1404_p4 }
  0x3a   : > { %p1400_p3 = pneg %p1399_p2 }
  0x3c   : > { %p1407_p11 = pnand %p1406_p8, %p1400_p3 }
  0x3e   : > { %1410 = shalt.err (!%p1407_p11)
}
  0x3f   : > { %s1487_s23 = smov 64   ;;  %s1488_s25 = smov 4  }
  0x40   : > { %1214 = dma.hbm_to_vmem [thread:$0]  (!%p1581_p12), %s1709_s3, 4096, %s1585_s10, [#allocation6], %s1487_s23, %s1487_s23, %s1488_s25  }
  0x41   : > { %p1719_p13 = scmp.ne.s32.totalorder %s1717_s30, 0 }
  0x42   : > { %p1720_p0 = scmp.eq.s32.totalorder (!%p1719_p13), %s1545_s22, 0 }
  0x43   : > { %217 = sbr.rel (%p1719_p13) target bundleno = 993 (0x3e1), region = 40 }
  0x4a   : > { %1456 = dma.done.wait (%p1720_p0), [#allocation3], 4096   ;;  %p1721_p5 = pmov %p1720_p0 }
  0x4b   : > { %p1722_p6 = pmov %p1720_p0 }
  0x4c   : > { %1458 = vsyncadd (%p1721_p5), [#allocation3], 4294963200 }
  0x4d   : > { %1460 = dma.done.wait (%p1722_p6), [#allocation6], 4096   ;;  %p1723_p9 = pmov %p1720_p0 }
  0x4e   : > { %s1066_s8 = sshll.u32 %s1545_s22, 1  ;;  %v1489_v0 = vmov 0   ;;  %v1267_v3 = vld [vmem:[#allocation2 + $0x4] ss:$16 sps:$4 sm:$0xff]   ;;  %v1269_v4 = vld [vmem:[#allocation2 + $0xc] ss:$16 sps:$4 sm:$0xff]   ;;  %v259_v37 = vlaneseq }
  0x4f   : > { %1462 = vsyncadd (%p1723_p9), [#allocation6], 4294963200  ;;  %1266 = vset.pattern.permute.xlu0 %v1489_v0  ;;  %p250_p12 = scmp.lt.s32.totalorder %s1066_s8, 3  ;;  %520 = vmatprep.mubr.bf16.mxu0 %v1489_v0  ;;  %v1271_v5 = vld [vmem:[#allocation2] ss:$16 sps:$4 sm:$0xff]   ;;  %v1319_v43 = vld [vmem:[#allocation5 + $0x48] sm:$0xff]  }
  0x50   : > { %563 = vmatprep.mubr.bf16.mxu1 %v1489_v0  ;;  %488 = vmatprep.subr.bf16.mxu0 %v1267_v3  ;;  %v1272_v6 = vld [vmem:[#allocation2 + $0x8] ss:$16 sps:$4 sm:$0xff]   ;;  %v1273_v7 = vld [vmem:[#allocation2 + $0x24] ss:$16 sps:$4 sm:$0xff]   ;;  %v1275_v8 = vld [vmem:[#allocation2 + $0x2c] ss:$16 sps:$4 sm:$0xff]  }
  0x51   : > { %s1731_s8 = smov (!%p250_p12, %s1066_s8), 3  ;;  %531 = vmatprep.subr.bf16.mxu1 %v1269_v4  ;;  %489 = vmatpush1.bf16.msra.mxu0 %v1271_v5  ;;  %v1277_v9 = vld [vmem:[#allocation2 + $0x20] ss:$16 sps:$4 sm:$0xff]   ;;  %v1278_v10 = vld [vmem:[#allocation2 + $0x28] ss:$16 sps:$4 sm:$0xff]   ;;  %v260_v39 = vand.u32 127, %v259_v37 }
  0x52   : > { %s1067_s30 = sshll.u32 %s1731_s8, 3  ;;  %532 = vmatpush1.bf16.msra.mxu1 %v1272_v6  ;;  %490 = vmatprep.subr.bf16.mxu0 %v1273_v7  ;;  %v1279_v11 = vld [vmem:[#allocation2 + $0x44] ss:$16 sps:$4 sm:$0xff]   ;;  %v1281_v12 = vld [vmem:[#allocation2 + $0x4c] ss:$16 sps:$4 sm:$0xff]   ;;  %s246_s16 = sand.u32 1, %s1473_s19  }
  0x53   : > { %s253_s11 = scalar_lea.vmem %s1706_s0, %s1067_s30  ;;  %533 = vmatprep.subr.bf16.mxu1 %v1275_v8  ;;  %v1283_v13 = vld [vmem:[#allocation2 + $0x40] ss:$16 sps:$4 sm:$0xff]   ;;  %v1284_v14 = vld [vmem:[#allocation2 + $0x48] ss:$16 sps:$4 sm:$0xff]   ;;  %v1285_v15 = vld [vmem:[#allocation2 + $0x64] ss:$16 sps:$4 sm:$0xff]  }
  0x54   : > { %v257_v1 = vld [vmem:[%s253_s11] sm:$0xff]  ;;  %v258_v2 = vld [vmem:[%s253_s11 + $0x8] sm:$0xff]  ;;  %v1490_v45 = vmov 1.0|1.0   ;;  %v1323_v48 = vld [vmem:[#allocation5 + $0x50] sm:$0xff]   ;;  %v309_v8 = vshrl.u32 %v259_v37, 7 }
  0x55   : > { %262 = vperm.xlu0 %1266, %v257_v1   ;;  %491 = vmatpush1.bf16.msra.mxu0 %v1277_v9  ;;  %v1287_v16 = vld [vmem:[#allocation2 + $0x6c] ss:$16 sps:$4 sm:$0xff]   ;;  %v1289_v17 = vld [vmem:[#allocation2 + $0x60] ss:$16 sps:$4 sm:$0xff]   ;;  %v1290_v18 = vld [vmem:[#allocation2 + $0x68] ss:$16 sps:$4 sm:$0xff]  }
  0x56   : > { %534 = vmatpush1.bf16.msra.mxu1 %v1278_v10  ;;  %492 = vmatprep.subr.bf16.mxu0 %v1279_v11  ;;  %v1291_v19 = vld [vmem:[#allocation2 + $0x84] ss:$16 sps:$4 sm:$0xff]   ;;  %v1293_v20 = vld [vmem:[#allocation2 + $0x8c] ss:$16 sps:$4 sm:$0xff]   ;;  %v1295_v21 = vld [vmem:[#allocation2 + $0x80] ss:$16 sps:$4 sm:$0xff]  }
  0x57   : > { %535 = vmatprep.subr.bf16.mxu1 %v1281_v12  ;;  %v1296_v22 = vld [vmem:[#allocation2 + $0x88] ss:$16 sps:$4 sm:$0xff]   ;;  %v1297_v23 = vld [vmem:[#allocation2 + $0xa4] ss:$16 sps:$4 sm:$0xff]   ;;  %v1299_v24 = vld [vmem:[#allocation2 + $0xac] ss:$16 sps:$4 sm:$0xff]  }
  0x58   : > { %v1301_v25 = vld [vmem:[#allocation2 + $0xa0] ss:$16 sps:$4 sm:$0xff]   ;;  %v1302_v26 = vld [vmem:[#allocation2 + $0xa8] ss:$16 sps:$4 sm:$0xff]   ;;  %v1303_v27 = vld [vmem:[#allocation2 + $0xc4] ss:$16 sps:$4 sm:$0xff]  }
  0x59   : > { %265 = vperm.xlu0 %1266, %v258_v2   ;;  %493 = vmatpush1.bf16.msra.mxu0 %v1283_v13  ;;  %v1305_v28 = vld [vmem:[#allocation2 + $0xcc] ss:$16 sps:$4 sm:$0xff]   ;;  %v1307_v29 = vld [vmem:[#allocation2 + $0xc0] ss:$16 sps:$4 sm:$0xff]   ;;  %v1308_v30 = vld [vmem:[#allocation2 + $0xc8] ss:$16 sps:$4 sm:$0xff]  }
  0x5a   : > { %536 = vmatpush1.bf16.msra.mxu1 %v1284_v14  ;;  %494 = vmatprep.subr.bf16.mxu0 %v1285_v15  ;;  %v1309_v31 = vld [vmem:[#allocation2 + $0xe4] ss:$16 sps:$4 sm:$0xff]   ;;  %v1311_v32 = vld [vmem:[#allocation2 + $0xec] ss:$16 sps:$4 sm:$0xff]   ;;  %v1313_v33 = vld [vmem:[#allocation2 + $0xe0] ss:$16 sps:$4 sm:$0xff]  }
  0x5b   : > { %537 = vmatprep.subr.bf16.mxu1 %v1287_v16  ;;  %v1314_v34 = vld [vmem:[#allocation2 + $0xe8] ss:$16 sps:$4 sm:$0xff]   ;;  %v1315_v35 = vld [vmem:[#allocation5 + $0x40] sm:$0xff]   ;;  %v1324_v49 = vld [vmem:[#allocation5 + $0xd0] sm:$0xff]   ;;  %v310_v9 = vsub.s32 0, %v309_v8  ;;  %v318_v10 = vsub.s32 2, %v309_v8 }
  0x5c   : > { %v1316_v36 = vld [vmem:[#allocation5 + $0xc0] sm:$0xff]   ;;  %v1320_v44 = vld [vmem:[#allocation5 + $0xc8] sm:$0xff]   ;;  %v1325_v50 = vld [vmem:[#allocation5 + $0x10] sm:$0xff]   ;;  %v314_v12 = vsub.s32 1, %v309_v8  ;;  %v322_v13 = vsub.s32 3, %v309_v8  ;;  %s1065_s17 = sshll.u32 %s246_s16, 3 }
  0x5d   : > { %495 = vmatpush1.bf16.msra.mxu0 %v1289_v17  ;;  %v1317_v41 = vld [vmem:[#allocation5] sm:$0xff]   ;;  %v1321_v46 = vld [vmem:[#allocation5 + $0x8] sm:$0xff]   ;;  %v1326_v51 = vld [vmem:[#allocation5 + $0x90] sm:$0xff]   ;;  %s1148_s7 = sshll.u32 %s1545_s22, 7  ;;  %s248_s23 = scalar_lea.vmem [#allocation7], %s1065_s17 }
  0x5e   : > { %538 = vmatpush1.bf16.msra.mxu1 %v1290_v18  ;;  %496 = vmatprep.subr.bf16.mxu0 %v1291_v19  ;;  %v1318_v42 = vld [vmem:[#allocation5 + $0x80] sm:$0xff]   ;;  %v1322_v47 = vld [vmem:[#allocation5 + $0x88] sm:$0xff]   ;;  %v1327_v52 = vld [vmem:[#allocation5 + $0x58] sm:$0xff]   ;;  %s973_s25 = sshll.u32 %s248_s23, 4  ;;  %s1661_s8 = scalar_lea.hbm %s1711_s5, %s1148_s7  ;;  %s1663_s25 = int_to_ptr.vmem [resolvable:$true] %s973_s25 }
  0x5f   : > { %539 = vmatprep.subr.bf16.mxu1 %v1293_v20  ;;  %v1328_v53 = vld [vmem:[#allocation5 + $0xd8] sm:$0xff]   ;;  %v1331_v56 = vld [vmem:[#allocation5 + $0x60] sm:$0xff]   ;;  %v1335_v60 = vld [vmem:[#allocation5 + $0x68] sm:$0xff]   ;;  %s1665_s30 = scalar_lea.sflag [#allocation4], %s246_s16  ;;  %s1411_s22 = scalar_lea.vmem %s1663_s25, 128 }
  0x60   : > { %v1329_v54 = vld [vmem:[#allocation5 + $0x18] sm:$0xff]   ;;  %v1332_v57 = vld [vmem:[#allocation5 + $0xe0] sm:$0xff]   ;;  %v1336_v61 = vld [vmem:[#allocation5 + $0xe8] sm:$0xff]   ;;  %p1412_p10 = scmp.ne.s32.totalorder %s1663_s25, %s1411_s22  ;;  %p1724_p1 = scmp.ne.s32.totalorder %s1715_s28, 0 }
  0x61   : > { %497 = vmatpush1.bf16.msra.mxu0 %v1295_v21  ;;  %v1330_v55 = vld [vmem:[#allocation5 + $0x98] sm:$0xff]   ;;  %v1333_v58 = vld [vmem:[#allocation5 + $0x20] sm:$0xff]   ;;  %v1337_v62 = vld [vmem:[#allocation5 + $0x28] sm:$0xff]   ;;  %s1491_s10 = smov [#allocation7]  }
  0x62   : > { %540 = vmatpush1.bf16.msra.mxu1 %v1296_v22  ;;  %498 = vmatprep.subr.bf16.mxu0 %v1297_v23  ;;  %v1334_v59 = vld [vmem:[#allocation5 + $0xa0] sm:$0xff]   ;;  %v1338_v63 = vld [vmem:[#allocation5 + $0xa8] sm:$0xff]   ;;  %v1339_v0 = vld [vmem:[#allocation5 + $0x70] sm:$0xff]   ;;  %p1413_p2 = pnand %p1412_p10, %p1724_p1  ;;  %s1415_s9 = sshll.u32 %s1491_s10, 4  ;;  %s1416_s9 = int_to_ptr.vmem [resolvable:$false] %s1415_s9 }
  0x63   : > { %541 = vmatprep.subr.bf16.mxu1 %v1299_v24  ;;  %v1340_v1 = vld [vmem:[#allocation5 + $0xf0] sm:$0xff]   ;;  %v1343_v4 = vld [vmem:[#allocation5 + $0x78] sm:$0xff]   ;;  %v306_v11 = vld [vmem:[%s1708_s2] sm:$0xf]  ;;  %s1417_s11 = scalar_lea.vmem %s1416_s9, 256  ;;  %p1418_p4 = scmp.lt.s32.totalorder %s1663_s25, %s1416_s9 }
  0x64   : > { %v1341_v2 = vld [vmem:[#allocation5 + $0x30] sm:$0xff]   ;;  %v1344_v5 = vld [vmem:[#allocation5 + $0xf8] sm:$0xff]   ;;  %v311_v14 = vrot.slane %v306_v11, %v310_v9  ;;  %v319_v15 = vrot.slane %v306_v11, %v318_v10  ;;  %v315_v16 = vrot.slane %v306_v11, %v314_v12  ;;  %v323_v17 = vrot.slane %v306_v11, %v322_v13  ;;  %p1414_p3 = pneg %p1413_p2  ;;  %p1419_p7 = scmp.lt.s32.totalorder %s1417_s11, %s1411_s22 }
  0x65   : > { %499 = vmatpush1.bf16.msra.mxu0 %v1301_v25  ;;  %v1342_v3 = vld [vmem:[#allocation5 + $0xb0] sm:$0xff]   ;;  %v1345_v6 = vld [vmem:[#allocation5 + $0x38] sm:$0xff]  }
  0x66   : > { %542 = vmatpush1.bf16.msra.mxu1 %v1302_v26  ;;  %500 = vmatprep.subr.bf16.mxu0 %v1303_v27  ;;  %v1346_v7 = vld [vmem:[#allocation5 + $0xb8] sm:$0xff]   ;;  %p1420_p8 = por %p1419_p7, %p1418_p4 }
  0x67   : > { %543 = vmatprep.subr.bf16.mxu1 %v1305_v28 }
  0x68   : > { %p1421_p11 = pnand %p1420_p8, %p1414_p3 }
  0x69   : > { %501 = vmatpush1.bf16.msra.mxu0 %v1307_v29 }
  0x6a   : > { %544 = vmatpush1.bf16.msra.mxu1 %v1308_v30  ;;  %502 = vmatprep.subr.bf16.mxu0 %v1309_v31 }
  0x6b   : > { %545 = vmatprep.subr.bf16.mxu1 %v1311_v32 }
  0x6d   : > { %503 = vmatpush1.bf16.msra.mxu0 %v1313_v33 }
  0x6e   : > { %546 = vmatpush1.bf16.msra.mxu1 %v1314_v34  ;;  %1154 = vmatprep.subr.bf16.mxu0 %v1315_v35 }
  0x6f   : > { %1176 = vmatprep.subr.bf16.mxu1 %v1316_v36 }
  0xd4   : > { %v263_v38 = vpop.permute.xlu0 %262 }
  0xd5   : > { %vm267_vm0 = vcmp.eq.s32.totalorder %v260_v39, %v263_v38 }
  0xd8   : > { %v266_v40 = vpop.permute.xlu0 %265 }
  0xd9   : > { %vm268_vm1 = vcmp.eq.s32.totalorder %v260_v39, %v266_v40 }
  0xda   : > { %vm1102_vm2 = vmpackc.low %vm268_vm1, %vm267_vm0 }
  0xdb   : > { %1103 = vmatmul.mubr.msk.bf16.vlgmr.msra.gmra.mrb[0].mxu0 %vm1102_vm2, %v1490_v45  ;;  %1105 = vmatmul.mubr.msk.bf16.vlgmr.msra.gmra.mrb[0].mxu1 %vm1102_vm2, %v1490_v45 }
  0xdc   : > { %1155 = vmatpush3.bf16.msra.mxu0 %v1317_v41  ;;  %1177 = vmatpush3.bf16.msra.mxu1 %v1318_v42 }
  0xdd   : > { %1156 = vmatprep.subr.bf16.mxu0 %v1319_v43  ;;  %1178 = vmatprep.subr.bf16.mxu1 %v1320_v44 }
  0xe0   : > { %1157 = vmatpush3.bf16.msra.mxu0 %v1321_v46  ;;  %1179 = vmatpush3.bf16.msra.mxu1 %v1322_v47 }
  0xe1   : > { %1158 = vmatprep.subr.bf16.mxu0 %v1323_v48  ;;  %1180 = vmatprep.subr.bf16.mxu1 %v1324_v49  ;;  %v1106_v48 = vld [vmem:[%s1710_s4] ss:$0 sm:$0xff] }
  0xe4   : > { %1159 = vmatpush3.bf16.msra.mxu0 %v1325_v50  ;;  %1181 = vmatpush3.bf16.msra.mxu1 %v1326_v51 }
  0xe5   : > { %1160 = vmatprep.subr.bf16.mxu0 %v1327_v52  ;;  %1182 = vmatprep.subr.bf16.mxu1 %v1328_v53 }
  0xe8   : > { %1161 = vmatpush3.bf16.msra.mxu0 %v1329_v54  ;;  %1183 = vmatpush3.bf16.msra.mxu1 %v1330_v55 }
  0xe9   : > { %1162 = vmatprep.subr.bf16.mxu0 %v1331_v56  ;;  %1184 = vmatprep.subr.bf16.mxu1 %v1332_v57 }
  0xec   : > { %1163 = vmatpush3.bf16.msra.mxu0 %v1333_v58  ;;  %1185 = vmatpush3.bf16.msra.mxu1 %v1334_v59 }
  0xed   : > { %1164 = vmatprep.subr.bf16.mxu0 %v1335_v60  ;;  %1186 = vmatprep.subr.bf16.mxu1 %v1336_v61 }
  0xf0   : > { %1165 = vmatpush3.bf16.msra.mxu0 %v1337_v62  ;;  %1187 = vmatpush3.bf16.msra.mxu1 %v1338_v63 }
  0xf1   : > { %1166 = vmatprep.subr.bf16.mxu0 %v1339_v0  ;;  %1188 = vmatprep.subr.bf16.mxu1 %v1340_v1 }
  0xf4   : > { %1167 = vmatpush3.bf16.msra.mxu0 %v1341_v2  ;;  %1189 = vmatpush3.bf16.msra.mxu1 %v1342_v3 }
  0xf5   : > { %1168 = vmatprep.subr.bf16.mxu0 %v1343_v4  ;;  %1190 = vmatprep.subr.bf16.mxu1 %v1344_v5 }
  0xf8   : > { %1169 = vmatpush3.bf16.msra.mxu0 %v1345_v6  ;;  %1191 = vmatpush3.bf16.msra.mxu1 %v1346_v7 }
 0x1ae   : > { %v522_v18 = vpop.f32.mrb[0].mxu0  ;;  %v565_v19 = vpop.f32.mrb[0].mxu1 }
 0x1af   : > { %v523_v20 = vadd.f32 %v522_v18, %v311_v14  ;;  %v566_v21 = vadd.f32 %v565_v19, %v319_v15  ;;  %v524_v22 = vpop.f32.mrb[1].mxu0  ;;  %v567_v23 = vpop.f32.mrb[1].mxu1 }
 0x1b0   : > { %v525_v24 = vadd.f32 %v524_v22, %v315_v16  ;;  %v568_v25 = vadd.f32 %v567_v23, %v323_v17  ;;  %v526_v26 = vpop.f32.mrb[2].mxu0  ;;  %v569_v27 = vpop.f32.mrb[2].mxu1 }
 0x1b1   : > { %v527_v28 = vadd.f32 %v526_v26, %v311_v14  ;;  %v570_v29 = vadd.f32 %v569_v27, %v319_v15  ;;  %v528_v30 = vpop.f32.mrb[3].mxu0  ;;  %v571_v31 = vpop.f32.mrb[3].mxu1  ;;  %v574_v34 = vmax.f32 %v523_v20, 0.0  ;;  %v576_v35 = vmax.f32 %v566_v21, 0.0 }
 0x1b2   : > { %v529_v32 = vadd.f32 %v528_v30, %v315_v16  ;;  %v572_v33 = vadd.f32 %v571_v31, %v323_v17  ;;  %v575_v38 = vmax.f32 %v525_v24, 0.0  ;;  %v577_v39 = vmax.f32 %v568_v25, 0.0 }
 0x1b3   : > { %v578_v36 = vmax.f32 %v527_v28, 0.0  ;;  %v580_v37 = vmax.f32 %v570_v29, 0.0 }
 0x1b4   : > { %v579_v40 = vmax.f32 %v529_v32, 0.0  ;;  %v581_v41 = vmax.f32 %v572_v33, 0.0 }
 0x1b5   : > { %v582_v42 = vpack.c.bf16 %v578_v36, %v574_v34  ;;  %v584_v43 = vpack.c.bf16 %v580_v37, %v576_v35 }
 0x1b6   : > { %v583_v44 = vpack.c.bf16 %v579_v40, %v575_v38  ;;  %v585_v45 = vpack.c.bf16 %v581_v41, %v577_v39 }
 0x1b8   : > { %881 = vmatprep.mubr.bf16.mxu0 %v583_v44  ;;  %922 = vmatprep.mubr.bf16.mxu1 %v585_v45 }
 0x1b9   : > { %882 = vmatmul.mubr.bf16.vlgmr.msra.gmra.mrb[4].mxu0 %v582_v42  ;;  %923 = vmatmul.mubr.bf16.vlgmr.msra.gmra.mrb[4].mxu1 %v584_v43 }
 0x28c   : > { %v1170_v46 = vpop.f32.mrb[4].mxu0  ;;  %v1192_v47 = vpop.f32.mrb[4].mxu1 }
 0x28d   : > { %v1171_v49 = vpop.f32.mrb[5].mxu0  ;;  %v1193_v50 = vpop.f32.mrb[5].mxu1 }
 0x28e   : > { %v1172_v51 = vadd.f32 %v1171_v49, %v1170_v46  ;;  %v1194_v52 = vadd.f32 %v1193_v50, %v1192_v47  ;;  %v1173_v53 = vpop.f32.mrb[6].mxu0  ;;  %v1195_v54 = vpop.f32.mrb[6].mxu1 }
 0x28f   : > { %v1174_v55 = vpop.f32.mrb[7].mxu0  ;;  %v1196_v56 = vpop.f32.mrb[7].mxu1 }
 0x290   : > { %v884_v57 = vadd.f32 %v1172_v51, %v1106_v48  ;;  %v1175_v58 = vadd.f32 %v1174_v55, %v1173_v53  ;;  %v1197_v59 = vadd.f32 %v1196_v56, %v1195_v54 }
 0x292   : > { %v887_v60 = vadd.f32 %v1175_v58, %v1106_v48  ;;  %v925_v61 = vadd.f32 %v1194_v52, %v884_v57 }
 0x294   : > { %931 = vmax.xlane.f32.xlu1 %v925_v61  ;;  %v928_v62 = vadd.f32 %v1197_v59, %v887_v60 }
 0x298   : > { %933 = vmax.xlane.f32.xlu1 %v928_v62 }
 0x321   : > { %v932_v63 = vpop.xlane.xlu1 %931 }
 0x322   : > { %v935_v0 = vsub.f32 %v925_v61, %v932_v63 }
 0x324   : > { %v937_v1 = vmul.f32 1.442695, %v935_v0 }
 0x325   : > { %v934_v2 = vpop.xlane.xlu1 %933 }
 0x326   : > { %1347 = vpow2.f32 %v937_v1  ;;  %v936_v3 = vsub.f32 %v928_v62, %v934_v2 }
 0x328   : > { %v939_v4 = vmul.f32 1.442695, %v936_v3 }
 0x32a   : > { %1349 = vpow2.f32 %v939_v4 }
 0x330   : > { %v1348_v5 = vpop.eup %1347 }
 0x331   : > { %941 = vadd.xlane.f32.xlu0 %v1348_v5 }
 0x334   : > { %v1350_v6 = vpop.eup %1349 }
 0x335   : > { %943 = vadd.xlane.f32.xlu1 %v1350_v6 }
 0x3be   : > { %v942_v7 = vpop.xlane.xlu0 %941 }
 0x3bf   : > { %1351 = vrcp.f32 %v942_v7 }
 0x3c2   : > { %v944_v8 = vpop.xlane.xlu1 %943 }
 0x3c3   : > { %1353 = vrcp.f32 %v944_v8 }
 0x3c9   : > { %v1352_v9 = vpop.eup %1351 }
 0x3ca   : > { %v947_v11 = vmul.f32 %v1352_v9, %v1348_v5 }
 0x3cd   : > { %v1354_v10 = vpop.eup %1353 }
 0x3ce   : > { %v948_v12 = vmul.f32 %v1354_v10, %v1350_v6 }
 0x3d0   : > { %v1152_v13 = vpack.c.bf16 %v948_v12, %v947_v11 }
 0x3d2   : > { %1153 = vst [vmem:[%s248_s23] sm:$0xff] %v1152_v13  }
 0x3d3   : > { %1424 = shalt.err (!%p1421_p11)
}
 0x3d4   : > { %s1425_s12 = scalar_lea.hbm %s1661_s8, 128  ;;  %s1429_s15 = scalar_lea.hbm %s1711_s5, 256 }
 0x3d5   : > { %p1426_p13 = scmp.ne.s32.totalorder %s1661_s8, %s1425_s12  ;;  %p1430_p6 = scmp.lt.u32.totalorder %s1661_s8, %s1711_s5 }
 0x3d6   : > { %p1431_p9 = scmp.lt.u32.totalorder %s1429_s15, %s1425_s12  ;;  %p1433_p10 = scmp.lt.u32.totalorder %s1425_s12, %s1661_s8 }
 0x3d7   : > { %p1427_p0 = pnand %p1426_p13, %p1724_p1 }
 0x3d8   : > { %p1432_p12 = por %p1431_p9, %p1430_p6 }
 0x3d9   : > { %p1428_p5 = pneg %p1427_p0 }
 0x3da   : > { %p1434_p2 = por %p1433_p10, %p1432_p12 }
 0x3dc   : > { %p1435_p3 = pnand %p1434_p2, %p1428_p5 }
 0x3de   : > { %1438 = shalt.err (!%p1435_p3)
}
 0x3df   : > { %s1492_s7 = smov 64   ;;  %s1493_s23 = smov 4  }
 0x3e0   : > { %1206 = dma.vmem_to_hbm [thread:$0]  (%p1724_p1), %s1663_s25, 128, %s1661_s8, %s1665_s30, %s1492_s7, %s1492_s7, %s1493_s23  }
 0x3e1 PF: > { %p1223_p4 = scmp.ge.s32.totalorder %s1481_s21, 2  ;;  %s988_s26 = sand.u32 1, %s1469_s18  }
 0x3e2   : > { %p1725_p7 = scmp.ne.s32.totalorder %s1716_s29, 0  ;;  %s989_s6 = scalar_lea.sflag [#allocation4], %s988_s26 }
 0x3e4   : > { %p1216_p8 = pnand %p1223_p4, %p1725_p7 }
 0x3e6   : > { %1464 = dma.done.wait (!%p1216_p8), %s989_s6, 128  }
 0x3e7   : > { %1466 = vsyncadd (!%p1216_p8), %s989_s6, 4294967168  ;;  %p17_p11 = scmp.ge.s32.totalorder %s1549_s24, 4   ;;  %s1726_s18 = smov %s1473_s19 }
 0x3e8   : > { %s1727_s19 = smov %s1477_s20  ;;  %s1728_s20 = smov %s1560_s27 }
 0x3e9   : > { %s1729_s21 = smov %s1549_s24  ;;  %19 = sbr.rel (!%p17_p11) target bundleno = 5 (0x5), region = 84 }
 0x3f0   :  { %994 = vsyncpa [#allocation3], 1 }
 0x3f1   :  { %996 = vsyncpa [#allocation3 + $0x1], 1 }
 0x3f2   :  { %997 = vsyncpa [#allocation6], 1 }
 0x3f3   :  { %998 = vsyncpa [#allocation4], 1 }
 0x3f4   :  { %1000 = vsyncpa [#allocation4 + $0x1], 1 }

</bundles_post_ra>
